<compile_context>
chip_gen: v6e
topology: v6e:2x2x1
jax: 0.10.0
libtpu: 0.0.40
codegen_flags: <defaults>
</compile_context>

<pallas_src>
import functools
import math

import jax
import jax.numpy as jnp
from jax.experimental import pallas as pl
from jax.experimental.pallas import tpu as pltpu


# ---------------------------------------------------------------------------
# In-kernel helpers (all f32)
# ---------------------------------------------------------------------------
def _erf(x):
    # Abramowitz & Stegun 7.1.26 rational approximation (|err| < 1.5e-7),
    # built only from ops Mosaic lowers natively (exp / mul / add / where).
    a1, a2, a3, a4, a5 = (0.254829592, -0.284496736, 1.421413741,
                          -1.453152027, 1.061405429)
    p = 0.3275911
    sgn = jnp.where(x >= 0.0, 1.0, -1.0)
    ax = jnp.abs(x)
    t = 1.0 / (1.0 + p * ax)
    poly = ((((a5 * t + a4) * t + a3) * t + a2) * t + a1) * t
    return sgn * (1.0 - poly * jnp.exp(-ax * ax))


def _gelu_exact(x):
    # nn.GELU() default = exact (erf-based) GELU.
    return 0.5 * x * (1.0 + _erf(x * (1.0 / math.sqrt(2.0))))


def _layernorm(x, g, b, eps=1e-5):
    # Matches torch.nn.LayerNorm (biased variance, eps=1e-5).
    mu = jnp.mean(x, axis=-1, keepdims=True)
    var = jnp.mean((x - mu) ** 2, axis=-1, keepdims=True)
    return (x - mu) * jax.lax.rsqrt(var + eps) * g + b


# ---------------------------------------------------------------------------
# Fused kernel: grid = (batch, depth).  The residual stream lives in o_ref
# (same output block across the depth axis => resident accumulator in VMEM).
# Packed-vector slab rows: 0 ln1_g | 1 ln1_b | 2 b_out | 3 ln2_g | 4 ln2_b
#                          5 b2    | 6,7 pad
# ---------------------------------------------------------------------------
def fused_transformer_kernel(x_ref, wqkv_ref, wout_ref, vecs_ref, w1_ref,
                             b1_ref, w2_ref, o_ref, *, heads, dim_head):
    layer = pl.program_id(1)
    bf16 = jnp.bfloat16
    scale = dim_head ** (-0.5)

    # Layer 0: seed the resident residual stream from the input block.
    @pl.when(layer == 0)
    def _():
        o_ref[...] = x_ref[...]

    x = o_ref[0]                                             # (N, D) f32
    vecs = vecs_ref[0]                                       # (8, D) f32
    ln1_g, ln1_b, b_out = vecs[0:1], vecs[1:2], vecs[2:3]
    ln2_g, ln2_b, b2 = vecs[3:4], vecs[4:5], vecs[5:6]

    # ---------------- Attention: x + to_out(softmax(QK^T) V) ----------------
    xn = _layernorm(x, ln1_g, ln1_b)                         # (N, D) f32
    h3 = 3 * heads
    xh = jnp.broadcast_to(xn.astype(bf16)[None],
                          (h3,) + xn.shape)                  # (3h, N, D) bf16

    # Single fused q/k/v projection: leading-batch batched matmul
    # (bf16 MXU, f32 accumulation), then cheap leading-axis splits.
    qkv = jnp.einsum('hnd,hde->hne', xh, wqkv_ref[0],
                     preferred_element_type=jnp.float32)     # (3h, N, dh)
    q = qkv[:heads] * scale                                  # (h, N, dh)
    k = qkv[heads:2 * heads]
    v = qkv[2 * heads:]

    dots = jnp.einsum('hie,hje->hij', q.astype(bf16), k.astype(bf16),
                      preferred_element_type=jnp.float32)    # (h, N, N)
    dots = dots - jnp.max(dots, axis=-1, keepdims=True)
    e = jnp.exp(dots)
    attn = e * pl.reciprocal(jnp.sum(e, axis=-1, keepdims=True), approx=True)

    ctx = jnp.einsum('hij,hje->hie', attn.astype(bf16), v.astype(bf16),
                     preferred_element_type=jnp.float32)     # (h, N, dh)

    # to_out: concat over heads then Linear == sum_h ctx_h @ Wout_h
    out_h = jnp.einsum('hie,heo->hio', ctx.astype(bf16), wout_ref[0],
                       preferred_element_type=jnp.float32)   # (h, N, D)
    attn_out = jnp.sum(out_h, axis=0) + b_out                # (N, D)

    x1 = x + attn_out                                        # residual

    # ---------------- FeedForward: x1 + W2(GELU(W1 LN(x1) + b1)) + b2 -------
    yn = _layernorm(x1, ln2_g, ln2_b)
    h1 = jnp.dot(yn.astype(bf16), w1_ref[0],
                 preferred_element_type=jnp.float32) + b1_ref[0]
    h1 = _gelu_exact(h1)                                     # f32 (v5e-safe)
    h2 = jnp.dot(h1.astype(bf16), w2_ref[0],
                 preferred_element_type=jnp.float32) + b2

    o_ref[0] = (x1 + h2).astype(o_ref.dtype)                 # residual


# ---------------------------------------------------------------------------
# Wrapper: one pallas_call for the whole (depth-fused) transformer.
# ---------------------------------------------------------------------------
def transformer_forward(x, params, *, heads, dim_head):
    B, N, D = x.shape
    depth = params["w1"].shape[0]

    kernel = functools.partial(fused_transformer_kernel,
                               heads=heads, dim_head=dim_head)

    def wspec(arr):
        # Per-layer weight block: full trailing dims, indexed by the depth axis.
        nzeros = arr.ndim - 1
        return pl.BlockSpec((1,) + arr.shape[1:],
                            lambda b, l, _n=nzeros: (l,) + (0,) * _n)

    in_specs = [
        pl.BlockSpec((1, N, D), lambda b, l: (b, 0, 0)),   # x
        wspec(params["wqkv"]),   # (depth, 3h, D, dh)  bf16
        wspec(params["w_out"]),  # (depth, h, dh, D)   bf16
        wspec(params["vecs"]),   # (depth, 8, D)       f32
        wspec(params["w1"]),     # (depth, D, mlp)     bf16
        wspec(params["b1"]),     # (depth, 1, mlp)     f32
        wspec(params["w2"]),     # (depth, mlp, D)     bf16
    ]

    return pl.pallas_call(
        kernel,
        out_shape=jax.ShapeDtypeStruct((B, N, D), x.dtype),
        grid_spec=pltpu.PrefetchScalarGridSpec(
            num_scalar_prefetch=0,
            grid=(B, depth),                       # depth innermost, sequential
            in_specs=in_specs,
            out_specs=pl.BlockSpec((1, N, D), lambda b, l: (b, 0, 0)),
        ),
        compiler_params=pltpu.CompilerParams(
            dimension_semantics=("parallel", "arbitrary"),
            vmem_limit_bytes=32 * 1024 * 1024),
    )(x, params["wqkv"], params["w_out"], params["vecs"],
      params["w1"], params["b1"], params["w2"])


# ---------------------------------------------------------------------------
# Deterministic parameter init.  Weights are stacked over depth, stored bf16
# and pre-permuted on the host into head-major layouts so the kernel can use
# leading-batch batched matmuls with zero in-kernel transposes.  LN params /
# biases stay f32 and are packed into one (depth, 8, dim) slab.
# ---------------------------------------------------------------------------
def init_transformer_params(key, dim, depth, heads, dim_head, mlp_dim):
    inner = heads * dim_head

    def to_heads(w):  # (dim, heads*dh) -> (heads, dim, dh)
        return jnp.transpose(w.reshape(dim, heads, dim_head), (1, 0, 2))

    wqkv_l, wout_l, vecs_l, w1_l, b1_l, w2_l = [], [], [], [], [], []
    for l in range(depth):
        k = jax.random.split(jax.random.fold_in(key, l), 4)
        w_qkv = 0.05 * jax.random.normal(k[0], (dim, 3 * inner), jnp.float32)
        wq, wk, wv = jnp.split(w_qkv, 3, axis=1)              # (dim, inner) each
        w_out = 0.05 * jax.random.normal(k[1], (inner, dim), jnp.float32)

        wqkv_l.append(jnp.concatenate(
            [to_heads(wq), to_heads(wk), to_heads(wv)], axis=0
        ).astype(jnp.bfloat16))                               # (3h, dim, dh)
        wout_l.append(w_out.reshape(heads, dim_head, dim).astype(jnp.bfloat16))

        # rows: ln1_g, ln1_b, b_out, ln2_g, ln2_b, b2, pad, pad
        vecs_l.append(jnp.stack([
            jnp.ones((dim,), jnp.float32),
            jnp.zeros((dim,), jnp.float32),
            jnp.zeros((dim,), jnp.float32),
            jnp.ones((dim,), jnp.float32),
            jnp.zeros((dim,), jnp.float32),
            jnp.zeros((dim,), jnp.float32),
            jnp.zeros((dim,), jnp.float32),
            jnp.zeros((dim,), jnp.float32),
        ], axis=0))                                           # (8, dim)

        w1_l.append((0.05 * jax.random.normal(k[2], (dim, mlp_dim)))
                    .astype(jnp.bfloat16))
        b1_l.append(jnp.zeros((1, mlp_dim), jnp.float32))
        w2_l.append((0.05 * jax.random.normal(k[3], (mlp_dim, dim)))
                    .astype(jnp.bfloat16))

    return {
        "wqkv": jnp.stack(wqkv_l, axis=0),
        "w_out": jnp.stack(wout_l, axis=0),
        "vecs": jnp.stack(vecs_l, axis=0),
        "w1": jnp.stack(w1_l, axis=0),
        "b1": jnp.stack(b1_l, axis=0),
        "w2": jnp.stack(w2_l, axis=0),
    }


if __name__ == "__main__":
    # Small config consistent with Transformer(dim, depth, heads, dim_head, mlp_dim)
    B, N = 2, 8
    dim, depth, heads, dim_head, mlp_dim = 32, 2, 4, 8, 64

    key = jax.random.PRNGKey(0)
    kx, kp = jax.random.split(key)
    x = jax.random.normal(kx, (B, N, dim), dtype=jnp.float32)

    params = init_transformer_params(kp, dim, depth, heads, dim_head, mlp_dim)

    out = transformer_forward(x, params, heads=heads, dim_head=dim_head)
    out = jax.block_until_ready(out)
    assert out.shape == (B, N, dim) and out.dtype == jnp.float32
    assert bool(jnp.all(jnp.isfinite(out)))
    print("KERNEL_OK")
</pallas_src>

<mosaic_0001>
module attributes {stable_mosaic.version = 11 : i64} {
  func.func @fused_transformer_kernel(%arg0: i32, %arg1: i32, %arg2: memref<1x8x32xf32, #tpu.memory_space<vmem>>, %arg3: memref<1x12x32x8xbf16, #tpu.memory_space<vmem>>, %arg4: memref<1x4x8x32xbf16, #tpu.memory_space<vmem>>, %arg5: memref<1x8x32xf32, #tpu.memory_space<vmem>>, %arg6: memref<1x32x64xbf16, #tpu.memory_space<vmem>>, %arg7: memref<1x1x64xf32, #tpu.memory_space<vmem>>, %arg8: memref<1x64x32xbf16, #tpu.memory_space<vmem>>, %arg9: memref<1x8x32xf32, #tpu.memory_space<vmem>>) attributes {dimension_semantics = [#tpu.dimension_semantics<parallel>, #tpu.dimension_semantics<arbitrary>], iteration_bounds = array<i64: 2, 2>, scalar_prefetch = 0 : i64, scratch_operands = 0 : i64, tpu.core_type = #tpu.core_type<tc>, window_params = [{transform_indices = @transform_0, window_bounds = array<i64: 1, 8, 32>}, {transform_indices = @transform_1, window_bounds = array<i64: 1, 12, 32, 8>}, {transform_indices = @transform_2, window_bounds = array<i64: 1, 4, 8, 32>}, {transform_indices = @transform_3, window_bounds = array<i64: 1, 8, 32>}, {transform_indices = @transform_4, window_bounds = array<i64: 1, 32, 64>}, {transform_indices = @transform_5, window_bounds = array<i64: 1, 1, 64>}, {transform_indices = @transform_6, window_bounds = array<i64: 1, 64, 32>}, {transform_indices = @transform_7, window_bounds = array<i64: 1, 8, 32>}]} {
    %c0_i32 = arith.constant 0 : i32
    %0 = arith.cmpi eq, %arg1, %c0_i32 : i32
    %1 = arith.extui %0 : i1 to i32
    %c0_i32_0 = arith.constant 0 : i32
    %2 = arith.cmpi ne, %1, %c0_i32_0 : i32
    scf.if %2 {
      %c0_61 = arith.constant 0 : index
      %c0_62 = arith.constant 0 : index
      %c0_63 = arith.constant 0 : index
      %152 = vector.load %arg2[%c0_61, %c0_62, %c0_63] : memref<1x8x32xf32, #tpu.memory_space<vmem>>, vector<1x8x32xf32>
      %c0_64 = arith.constant 0 : index
      %c0_65 = arith.constant 0 : index
      %c0_66 = arith.constant 0 : index
      %153 = vector.load %arg9[%c0_64, %c0_65, %c0_66] : memref<1x8x32xf32, #tpu.memory_space<vmem>>, vector<1x8x32xf32>
      tpu.vector_store %arg9[%c0_64, %c0_65, %c0_66], %152 {strides = array<i32>} : memref<1x8x32xf32, #tpu.memory_space<vmem>>, vector<1x8x32xf32>,
    } else {
    }
    %c0 = arith.constant 0 : index
    %c0_1 = arith.constant 0 : index
    %c0_2 = arith.constant 0 : index
    %3 = vector.load %arg9[%c0, %c0_1, %c0_2] : memref<1x8x32xf32, #tpu.memory_space<vmem>>, vector<1x8x32xf32>
    %4 = vector.shape_cast %3 : vector<1x8x32xf32> to vector<8x32xf32>
    %c0_3 = arith.constant 0 : index
    %c0_4 = arith.constant 0 : index
    %c0_5 = arith.constant 0 : index
    %5 = vector.load %arg5[%c0_3, %c0_4, %c0_5] : memref<1x8x32xf32, #tpu.memory_space<vmem>>, vector<1x8x32xf32>
    %6 = vector.shape_cast %5 : vector<1x8x32xf32> to vector<8x32xf32>
    %7 = vector.extract_strided_slice %6 {offsets = [0, 0], sizes = [1, 32], strides = [1, 1]} : vector<8x32xf32> to vector<1x32xf32>
    %8 = vector.extract_strided_slice %6 {offsets = [1, 0], sizes = [1, 32], strides = [1, 1]} : vector<8x32xf32> to vector<1x32xf32>
    %9 = vector.extract_strided_slice %6 {offsets = [2, 0], sizes = [1, 32], strides = [1, 1]} : vector<8x32xf32> to vector<1x32xf32>
    %10 = vector.extract_strided_slice %6 {offsets = [3, 0], sizes = [1, 32], strides = [1, 1]} : vector<8x32xf32> to vector<1x32xf32>
    %11 = vector.extract_strided_slice %6 {offsets = [4, 0], sizes = [1, 32], strides = [1, 1]} : vector<8x32xf32> to vector<1x32xf32>
    %12 = vector.extract_strided_slice %6 {offsets = [5, 0], sizes = [1, 32], strides = [1, 1]} : vector<8x32xf32> to vector<1x32xf32>
    %cst = arith.constant dense<0.000000e+00> : vector<8xf32>
    %13 = vector.multi_reduction <add>, %4, %cst [1] : vector<8x32xf32> to vector<8xf32>
    %14 = vector.shape_cast %13 : vector<8xf32> to vector<8x1xf32>
    %cst_6 = arith.constant 3.200000e+01 : f32
    %15 = vector.broadcast %cst_6 : f32 to vector<8x1xf32>
    %16 = arith.divf %14, %15 : vector<8x1xf32>
    %17 = vector.broadcast %16 : vector<8x1xf32> to vector<8x32xf32>
    %18 = arith.subf %4, %17 : vector<8x32xf32>
    %19 = arith.mulf %18, %18 : vector<8x32xf32>
    %cst_7 = arith.constant dense<0.000000e+00> : vector<8xf32>
    %20 = vector.multi_reduction <add>, %19, %cst_7 [1] : vector<8x32xf32> to vector<8xf32>
    %21 = vector.shape_cast %20 : vector<8xf32> to vector<8x1xf32>
    %cst_8 = arith.constant 3.200000e+01 : f32
    %22 = vector.broadcast %cst_8 : f32 to vector<8x1xf32>
    %23 = arith.divf %21, %22 : vector<8x1xf32>
    %24 = vector.broadcast %16 : vector<8x1xf32> to vector<8x32xf32>
    %25 = arith.subf %4, %24 : vector<8x32xf32>
    %cst_9 = arith.constant 9.99999974E-6 : f32
    %26 = vector.broadcast %cst_9 : f32 to vector<8x1xf32>
    %27 = arith.addf %23, %26 : vector<8x1xf32>
    %28 = math.rsqrt %27 : vector<8x1xf32>
    %29 = vector.broadcast %28 : vector<8x1xf32> to vector<8x32xf32>
    %30 = arith.mulf %25, %29 : vector<8x32xf32>
    %31 = vector.broadcast %7 : vector<1x32xf32> to vector<8x32xf32>
    %32 = arith.mulf %30, %31 : vector<8x32xf32>
    %33 = vector.broadcast %8 : vector<1x32xf32> to vector<8x32xf32>
    %34 = arith.addf %32, %33 : vector<8x32xf32>
    %35 = arith.truncf %34 : vector<8x32xf32> to vector<8x32xbf16>
    %36 = vector.shape_cast %35 : vector<8x32xbf16> to vector<1x8x32xbf16>
    %37 = vector.shape_cast %36 : vector<1x8x32xbf16> to vector<1x8x32xbf16>
    %38 = vector.broadcast %37 : vector<1x8x32xbf16> to vector<12x8x32xbf16>
    %c0_10 = arith.constant 0 : index
    %c0_11 = arith.constant 0 : index
    %c0_12 = arith.constant 0 : index
    %c0_13 = arith.constant 0 : index
    %39 = vector.load %arg3[%c0_10, %c0_11, %c0_12, %c0_13] : memref<1x12x32x8xbf16, #tpu.memory_space<vmem>>, vector<1x12x32x8xbf16>
    %40 = vector.shape_cast %39 : vector<1x12x32x8xbf16> to vector<12x32x8xbf16>
    "tpu.trace_start"() <{level = 10 : i32, message = "hnd,hde->hne"}> : () -> ()
    %cst_14 = arith.constant dense<0.000000e+00> : vector<12x8x8xf32>
    %41 = tpu.matmul %38, %40, %cst_14 {dimension_numbers = #tpu.dot_dimension_numbers<[2], [1], [1], [2], [0, 0, 0, 1, 1, 2], [0], [0]>} : vector<12x8x32xbf16>, vector<12x32x8xbf16>, vector<12x8x8xf32> -> vector<12x8x8xf32>
    "tpu.trace_stop"() : () -> ()
    %42 = vector.extract_strided_slice %41 {offsets = [0, 0, 0], sizes = [4, 8, 8], strides = [1, 1, 1]} : vector<12x8x8xf32> to vector<4x8x8xf32>
    %cst_15 = arith.constant 0.353553385 : f32
    %43 = vector.broadcast %cst_15 : f32 to vector<4x8x8xf32>
    %44 = arith.mulf %42, %43 : vector<4x8x8xf32>
    %45 = vector.extract_strided_slice %41 {offsets = [4, 0, 0], sizes = [4, 8, 8], strides = [1, 1, 1]} : vector<12x8x8xf32> to vector<4x8x8xf32>
    %46 = vector.extract_strided_slice %41 {offsets = [8, 0, 0], sizes = [4, 8, 8], strides = [1, 1, 1]} : vector<12x8x8xf32> to vector<4x8x8xf32>
    %47 = arith.truncf %44 : vector<4x8x8xf32> to vector<4x8x8xbf16>
    %48 = arith.truncf %45 : vector<4x8x8xf32> to vector<4x8x8xbf16>
    "tpu.trace_start"() <{level = 10 : i32, message = "hie,hje->hij"}> : () -> ()
    %cst_16 = arith.constant dense<0.000000e+00> : vector<4x8x8xf32>
    %49 = tpu.matmul %47, %48, %cst_16 {dimension_numbers = #tpu.dot_dimension_numbers<[2], [2], [1], [1], [0, 0, 0, 1, 1, 1], [0], [0]>} : vector<4x8x8xbf16>, vector<4x8x8xbf16>, vector<4x8x8xf32> -> vector<4x8x8xf32>
    "tpu.trace_stop"() : () -> ()
    %cst_17 = arith.constant dense<0xFF800000> : vector<4x8xf32>
    %50 = vector.multi_reduction <maximumf>, %49, %cst_17 [2] : vector<4x8x8xf32> to vector<4x8xf32>
    %51 = vector.shape_cast %50 : vector<4x8xf32> to vector<4x8x1xf32>
    %52 = vector.broadcast %51 : vector<4x8x1xf32> to vector<4x8x8xf32>
    %53 = arith.subf %49, %52 : vector<4x8x8xf32>
    %54 = math.exp %53 : vector<4x8x8xf32>
    %cst_18 = arith.constant dense<0.000000e+00> : vector<4x8xf32>
    %55 = vector.multi_reduction <add>, %54, %cst_18 [2] : vector<4x8x8xf32> to vector<4x8xf32>
    %56 = vector.shape_cast %55 : vector<4x8xf32> to vector<4x8x1xf32>
    %57 = tpu.reciprocal %56 {approx = true} : vector<4x8x1xf32> -> vector<4x8x1xf32>
    %58 = vector.broadcast %57 : vector<4x8x1xf32> to vector<4x8x8xf32>
    %59 = arith.mulf %54, %58 : vector<4x8x8xf32>
    %60 = arith.truncf %59 : vector<4x8x8xf32> to vector<4x8x8xbf16>
    %61 = arith.truncf %46 : vector<4x8x8xf32> to vector<4x8x8xbf16>
    "tpu.trace_start"() <{level = 10 : i32, message = "hij,hje->hie"}> : () -> ()
    %cst_19 = arith.constant dense<0.000000e+00> : vector<4x8x8xf32>
    %62 = tpu.matmul %60, %61, %cst_19 {dimension_numbers = #tpu.dot_dimension_numbers<[2], [1], [1], [2], [0, 0, 0, 1, 1, 2], [0], [0]>} : vector<4x8x8xbf16>, vector<4x8x8xbf16>, vector<4x8x8xf32> -> vector<4x8x8xf32>
    "tpu.trace_stop"() : () -> ()
    %63 = arith.truncf %62 : vector<4x8x8xf32> to vector<4x8x8xbf16>
    %c0_20 = arith.constant 0 : index
    %c0_21 = arith.constant 0 : index
    %c0_22 = arith.constant 0 : index
    %c0_23 = arith.constant 0 : index
    %64 = vector.load %arg4[%c0_20, %c0_21, %c0_22, %c0_23] : memref<1x4x8x32xbf16, #tpu.memory_space<vmem>>, vector<1x4x8x32xbf16>
    %65 = vector.shape_cast %64 : vector<1x4x8x32xbf16> to vector<4x8x32xbf16>
    "tpu.trace_start"() <{level = 10 : i32, message = "hie,heo->hio"}> : () -> ()
    %cst_24 = arith.constant dense<0.000000e+00> : vector<4x8x32xf32>
    %66 = tpu.matmul %63, %65, %cst_24 {dimension_numbers = #tpu.dot_dimension_numbers<[2], [1], [1], [2], [0, 0, 0, 1, 1, 2], [0], [0]>} : vector<4x8x8xbf16>, vector<4x8x32xbf16>, vector<4x8x32xf32> -> vector<4x8x32xf32>
    "tpu.trace_stop"() : () -> ()
    %cst_25 = arith.constant dense<0.000000e+00> : vector<8x32xf32>
    %67 = vector.multi_reduction <add>, %66, %cst_25 [0] : vector<4x8x32xf32> to vector<8x32xf32>
    %68 = vector.broadcast %9 : vector<1x32xf32> to vector<8x32xf32>
    %69 = arith.addf %67, %68 : vector<8x32xf32>
    %70 = arith.addf %4, %69 : vector<8x32xf32>
    %cst_26 = arith.constant dense<0.000000e+00> : vector<8xf32>
    %71 = vector.multi_reduction <add>, %70, %cst_26 [1] : vector<8x32xf32> to vector<8xf32>
    %72 = vector.shape_cast %71 : vector<8xf32> to vector<8x1xf32>
    %cst_27 = arith.constant 3.200000e+01 : f32
    %73 = vector.broadcast %cst_27 : f32 to vector<8x1xf32>
    %74 = arith.divf %72, %73 : vector<8x1xf32>
    %75 = vector.broadcast %74 : vector<8x1xf32> to vector<8x32xf32>
    %76 = arith.subf %70, %75 : vector<8x32xf32>
    %77 = arith.mulf %76, %76 : vector<8x32xf32>
    %cst_28 = arith.constant dense<0.000000e+00> : vector<8xf32>
    %78 = vector.multi_reduction <add>, %77, %cst_28 [1] : vector<8x32xf32> to vector<8xf32>
    %79 = vector.shape_cast %78 : vector<8xf32> to vector<8x1xf32>
    %cst_29 = arith.constant 3.200000e+01 : f32
    %80 = vector.broadcast %cst_29 : f32 to vector<8x1xf32>
    %81 = arith.divf %79, %80 : vector<8x1xf32>
    %82 = vector.broadcast %74 : vector<8x1xf32> to vector<8x32xf32>
    %83 = arith.subf %70, %82 : vector<8x32xf32>
    %cst_30 = arith.constant 9.99999974E-6 : f32
    %84 = vector.broadcast %cst_30 : f32 to vector<8x1xf32>
    %85 = arith.addf %81, %84 : vector<8x1xf32>
    %86 = math.rsqrt %85 : vector<8x1xf32>
    %87 = vector.broadcast %86 : vector<8x1xf32> to vector<8x32xf32>
    %88 = arith.mulf %83, %87 : vector<8x32xf32>
    %89 = vector.broadcast %10 : vector<1x32xf32> to vector<8x32xf32>
    %90 = arith.mulf %88, %89 : vector<8x32xf32>
    %91 = vector.broadcast %11 : vector<1x32xf32> to vector<8x32xf32>
    %92 = arith.addf %90, %91 : vector<8x32xf32>
    %93 = arith.truncf %92 : vector<8x32xf32> to vector<8x32xbf16>
    %c0_31 = arith.constant 0 : index
    %c0_32 = arith.constant 0 : index
    %c0_33 = arith.constant 0 : index
    %94 = vector.load %arg6[%c0_31, %c0_32, %c0_33] : memref<1x32x64xbf16, #tpu.memory_space<vmem>>, vector<1x32x64xbf16>
    %95 = vector.shape_cast %94 : vector<1x32x64xbf16> to vector<32x64xbf16>
    %cst_34 = arith.constant dense<0.000000e+00> : vector<8x64xf32>
    %96 = tpu.matmul %93, %95, %cst_34 {dimension_numbers = #tpu.dot_dimension_numbers<[1], [0], [0], [1], [0, 0, 1, 1], [], []>} : vector<8x32xbf16>, vector<32x64xbf16>, vector<8x64xf32> -> vector<8x64xf32>
    %c0_35 = arith.constant 0 : index
    %c0_36 = arith.constant 0 : index
    %c0_37 = arith.constant 0 : index
    %97 = vector.load %arg7[%c0_35, %c0_36, %c0_37] : memref<1x1x64xf32, #tpu.memory_space<vmem>>, vector<1x1x64xf32>
    %98 = vector.shape_cast %97 : vector<1x1x64xf32> to vector<1x64xf32>
    %99 = vector.broadcast %98 : vector<1x64xf32> to vector<8x64xf32>
    %100 = arith.addf %96, %99 : vector<8x64xf32>
    %cst_38 = arith.constant 5.000000e-01 : f32
    %101 = vector.broadcast %cst_38 : f32 to vector<8x64xf32>
    %102 = arith.mulf %101, %100 : vector<8x64xf32>
    %cst_39 = arith.constant 0.707106769 : f32
    %103 = vector.broadcast %cst_39 : f32 to vector<8x64xf32>
    %104 = arith.mulf %100, %103 : vector<8x64xf32>
    %cst_40 = arith.constant 0.000000e+00 : f32
    %105 = vector.broadcast %cst_40 : f32 to vector<8x64xf32>
    %106 = arith.cmpf oge, %104, %105 : vector<8x64xf32>
    %cst_41 = arith.constant 1.000000e+00 : f32
    %cst_42 = arith.constant -1.000000e+00 : f32
    %107 = vector.broadcast %cst_41 : f32 to vector<8x64xf32>
    %108 = vector.broadcast %cst_42 : f32 to vector<8x64xf32>
    %109 = arith.select %106, %107, %108 : vector<8x64xi1>, vector<8x64xf32>
    %110 = math.absf %104 : vector<8x64xf32>
    %cst_43 = arith.constant 0.327591091 : f32
    %111 = vector.broadcast %cst_43 : f32 to vector<8x64xf32>
    %112 = arith.mulf %111, %110 : vector<8x64xf32>
    %cst_44 = arith.constant 1.000000e+00 : f32
    %113 = vector.broadcast %cst_44 : f32 to vector<8x64xf32>
    %114 = arith.addf %113, %112 : vector<8x64xf32>
    %cst_45 = arith.constant 1.000000e+00 : f32
    %115 = vector.broadcast %cst_45 : f32 to vector<8x64xf32>
    %116 = arith.divf %115, %114 : vector<8x64xf32>
    %cst_46 = arith.constant 1.06140542 : f32
    %117 = vector.broadcast %cst_46 : f32 to vector<8x64xf32>
    %118 = arith.mulf %117, %116 : vector<8x64xf32>
    %cst_47 = arith.constant -1.45315206 : f32
    %119 = vector.broadcast %cst_47 : f32 to vector<8x64xf32>
    %120 = arith.addf %118, %119 : vector<8x64xf32>
    %121 = arith.mulf %120, %116 : vector<8x64xf32>
    %cst_48 = arith.constant 1.42141378 : f32
    %122 = vector.broadcast %cst_48 : f32 to vector<8x64xf32>
    %123 = arith.addf %121, %122 : vector<8x64xf32>
    %124 = arith.mulf %123, %116 : vector<8x64xf32>
    %cst_49 = arith.constant -0.284496725 : f32
    %125 = vector.broadcast %cst_49 : f32 to vector<8x64xf32>
    %126 = arith.addf %124, %125 : vector<8x64xf32>
    %127 = arith.mulf %126, %116 : vector<8x64xf32>
    %cst_50 = arith.constant 0.254829586 : f32
    %128 = vector.broadcast %cst_50 : f32 to vector<8x64xf32>
    %129 = arith.addf %127, %128 : vector<8x64xf32>
    %130 = arith.mulf %129, %116 : vector<8x64xf32>
    %cst_51 = arith.constant 0.000000e+00 : f32
    %131 = vector.broadcast %cst_51 : f32 to vector<8x64xf32>
    %132 = arith.subf %131, %110 : vector<8x64xf32>
    %133 = arith.mulf %132, %110 : vector<8x64xf32>
    %134 = math.exp %133 : vector<8x64xf32>
    %135 = arith.mulf %130, %134 : vector<8x64xf32>
    %cst_52 = arith.constant 1.000000e+00 : f32
    %136 = vector.broadcast %cst_52 : f32 to vector<8x64xf32>
    %137 = arith.subf %136, %135 : vector<8x64xf32>
    %138 = arith.mulf %109, %137 : vector<8x64xf32>
    %cst_53 = arith.constant 1.000000e+00 : f32
    %139 = vector.broadcast %cst_53 : f32 to vector<8x64xf32>
    %140 = arith.addf %139, %138 : vector<8x64xf32>
    %141 = arith.mulf %102, %140 : vector<8x64xf32>
    %142 = arith.truncf %141 : vector<8x64xf32> to vector<8x64xbf16>
    %c0_54 = arith.constant 0 : index
    %c0_55 = arith.constant 0 : index
    %c0_56 = arith.constant 0 : index
    %143 = vector.load %arg8[%c0_54, %c0_55, %c0_56] : memref<1x64x32xbf16, #tpu.memory_space<vmem>>, vector<1x64x32xbf16>
    %144 = vector.shape_cast %143 : vector<1x64x32xbf16> to vector<64x32xbf16>
    %cst_57 = arith.constant dense<0.000000e+00> : vector<8x32xf32>
    %145 = tpu.matmul %142, %144, %cst_57 {dimension_numbers = #tpu.dot_dimension_numbers<[1], [0], [0], [1], [0, 0, 1, 1], [], []>} : vector<8x64xbf16>, vector<64x32xbf16>, vector<8x32xf32> -> vector<8x32xf32>
    %146 = vector.broadcast %12 : vector<1x32xf32> to vector<8x32xf32>
    %147 = arith.addf %145, %146 : vector<8x32xf32>
    %148 = arith.addf %70, %147 : vector<8x32xf32>
    %c0_58 = arith.constant 0 : index
    %c0_59 = arith.constant 0 : index
    %c0_60 = arith.constant 0 : index
    %149 = vector.load %arg9[%c0_58, %c0_59, %c0_60] : memref<1x8x32xf32, #tpu.memory_space<vmem>>, vector<1x8x32xf32>
    %150 = vector.shape_cast %149 : vector<1x8x32xf32> to vector<8x32xf32>
    %151 = vector.shape_cast %148 : vector<8x32xf32> to vector<1x8x32xf32>
    tpu.vector_store %arg9[%c0_58, %c0_59, %c0_60], %151 {strides = array<i32>} : memref<1x8x32xf32, #tpu.memory_space<vmem>>, vector<1x8x32xf32>,
    return
  }
  func.func @transform_0(%arg0: i32, %arg1: i32) -> (i32, i32, i32) {
    %c0_i32 = arith.constant 0 : i32
    %c0_i32_0 = arith.constant 0 : i32
    %c0_i32_1 = arith.constant 0 : i32
    return %arg0, %c0_i32, %c0_i32_0 : i32, i32, i32
  }
  func.func @transform_1(%arg0: i32, %arg1: i32) -> (i32, i32, i32, i32) {
    %c0_i32 = arith.constant 0 : i32
    %c0_i32_0 = arith.constant 0 : i32
    %c0_i32_1 = arith.constant 0 : i32
    %c0_i32_2 = arith.constant 0 : i32
    return %arg1, %c0_i32, %c0_i32_0, %c0_i32_1 : i32, i32, i32, i32
  }
  func.func @transform_2(%arg0: i32, %arg1: i32) -> (i32, i32, i32, i32) {
    %c0_i32 = arith.constant 0 : i32
    %c0_i32_0 = arith.constant 0 : i32
    %c0_i32_1 = arith.constant 0 : i32
    %c0_i32_2 = arith.constant 0 : i32
    return %arg1, %c0_i32, %c0_i32_0, %c0_i32_1 : i32, i32, i32, i32
  }
  func.func @transform_3(%arg0: i32, %arg1: i32) -> (i32, i32, i32) {
    %c0_i32 = arith.constant 0 : i32
    %c0_i32_0 = arith.constant 0 : i32
    %c0_i32_1 = arith.constant 0 : i32
    return %arg1, %c0_i32, %c0_i32_0 : i32, i32, i32
  }
  func.func @transform_4(%arg0: i32, %arg1: i32) -> (i32, i32, i32) {
    %c0_i32 = arith.constant 0 : i32
    %c0_i32_0 = arith.constant 0 : i32
    %c0_i32_1 = arith.constant 0 : i32
    return %arg1, %c0_i32, %c0_i32_0 : i32, i32, i32
  }
  func.func @transform_5(%arg0: i32, %arg1: i32) -> (i32, i32, i32) {
    %c0_i32 = arith.constant 0 : i32
    %c0_i32_0 = arith.constant 0 : i32
    %c0_i32_1 = arith.constant 0 : i32
    return %arg1, %c0_i32, %c0_i32_0 : i32, i32, i32
  }
  func.func @transform_6(%arg0: i32, %arg1: i32) -> (i32, i32, i32) {
    %c0_i32 = arith.constant 0 : i32
    %c0_i32_0 = arith.constant 0 : i32
    %c0_i32_1 = arith.constant 0 : i32
    return %arg1, %c0_i32, %c0_i32_0 : i32, i32, i32
  }
  func.func @transform_7(%arg0: i32, %arg1: i32) -> (i32, i32, i32) {
    %c0_i32 = arith.constant 0 : i32
    %c0_i32_0 = arith.constant 0 : i32
    %c0_i32_1 = arith.constant 0 : i32
    return %arg0, %c0_i32, %c0_i32_0 : i32, i32, i32
  }
}

</mosaic_0001>

<bundles_post_ra>
// kernel: tpu_custom_call.1
= control target key start
LH: loop header
LB: loop body
LE: loop exit
PB: predicated region body
PF: predicated region fallthrough
CT: control target
= control target key end

     0   :  { %s3118_s0 = inlined_call_operand.vmem [shape: f32[2,8,32], index: 0, kind: input, shape index: {}]   ;;  %s3119_s1 = inlined_call_operand.vmem [shape: bf16[2,12,32,8], index: 1, kind: input, shape index: {}]   ;;  %s3120_s2 = inlined_call_operand.vmem [shape: bf16[2,4,8,32], index: 2, kind: input, shape index: {}]   ;;  %s3121_s3 = inlined_call_operand.vmem [shape: f32[2,8,32], index: 3, kind: input, shape index: {}]   ;;  %s3122_s4 = inlined_call_operand.vmem [shape: bf16[2,32,64], index: 4, kind: input, shape index: {}]   ;;  %s3123_s5 = inlined_call_operand.vmem [shape: f32[2,1,64], index: 5, kind: input, shape index: {}]   ;;  %s3124_s6 = inlined_call_operand.vmem [shape: bf16[2,64,32], index: 6, kind: input, shape index: {}]   ;;  %s3125_s7 = inlined_call_operand.hbm [shape: f32[2,8,32], index: 7, kind: output, shape index: {}]  }
   0x1   :  { %3135 = sst [smem:[#allocation14_spill]] %s3118_s0 }
   0x2   :  { %3136 = sst [smem:[#allocation15_spill]] %s3119_s1 }
   0x3   :  { %12 = vsyncpa [#allocation3], 0 }
   0x4   :  { %14 = vsyncpa [#allocation3 + $0x1], 0  ;;  %s2703_s24 = smov 0   ;;  %s2705_s25 = smov 0  }
   0x5   :  { %s2707_s26 = smov 0   ;;  %s2709_s27 = smov 0  }
   0x6   :  { %s2711_s28 = smov 0   ;;  %s2713_s29 = smov 0  }
   0x7   :  { %s2715_s30 = smov 0   ;;  %s2717_s8 = smov 0  }
   0x8 LB: > { %3137 = sst [smem:[#allocation5_spill]] %s2629_s24  ;;  %s2100_s9 = sadd.s32 4294967295, %s2657_s8   ;;  %s2657_s8 = sphi %s2717_s8, %s20_s8   ;;  %s2653_s30 = sphi %s2715_s30, %s3159_s30   ;;  %s2649_s29 = sphi %s2713_s29, %s3158_s29   ;;  %s2645_s28 = sphi %s2711_s28, %s3157_s28   ;;  %s2641_s27 = sphi %s2709_s27, %s3156_s27   ;;  %s2637_s26 = sphi %s2707_s26, %s3155_s26   ;;  %s2633_s25 = sphi %s2705_s25, %s3161_s25   ;;  %s2629_s24 = sphi %s2703_s24, %s3160_s24  }
   0x9   : > { %3138 = sst [smem:[#allocation6_spill]] %s2637_s26  ;;  %s2101_s10 = sadd.s32 4294967294, %s2657_s8  }
   0xa   : > { %3139 = sst [smem:[#allocation7_spill]] %s2649_s29  ;;  %s29_s11 = sadd.s32 1, %s2649_s29 }
   0xb   : > { %3140 = sst [smem:[#allocation8_spill]] %s2653_s30  ;;  %p30_p0 = scmp.ge.s32.totalorder %s29_s11, 2 }
   0xc   : > { %3141 = sst [smem:[#allocation9_spill]] %s2657_s8  ;;  %s32_s12 = sadd.s32 1, %s2653_s30 }
   0xd   : > { %p231_p1 = scmp.ne.s32.totalorder %s2637_s26, %s2633_s25  ;;  %p232_p2 = scmp.eq.s32.totalorder %s2100_s9, 3 }
   0xe   : > { %s3163_s11 = smov (%p30_p0, %s29_s11), 0  ;;  %s3165_s12 = smov (!%p30_p0, %s32_s12), %s2653_s30 }
   0xf   : > { %3142 = sst [smem:[#allocation10_spill]] %s3163_s11  ;;  %p2752_p3 = por %p232_p2, %p231_p1 }
  0x10   : > { %p237_p4 = scmp.ne.s32.totalorder %s2633_s25, %s2629_s24  ;;  %p34_p5 = scmp.ge.s32.totalorder %s3165_s12, 2 }
  0x11   : > { %p238_p6 = scmp.eq.s32.totalorder %s2101_s10, 3  ;;  %p2104_p7 = scmp.ge.s32.totalorder %s2657_s8, 1 }
  0x12   : > { %p308_p8 = scmp.lt.s32.totalorder %s2657_s8, 5  ;;  %s3167_s12 = smov (%p34_p5, %s3165_s12), 0 }
  0x13   : > { %3144 = sst [smem:[#allocation11_spill]] %s3167_s12  ;;  %p2762_p9 = por %p238_p6, %p237_p4 }
  0x14   : > { %p309_p10 = pnand %p2104_p7, %p308_p8  ;;  %s218_s15 = ssub.s32 %s2653_s30, %s3167_s12 }
  0x15   : > { %s3145_s14 = scalar_select %p2762_p9, 1, 0 }
  0x16   : > { %s221_s16 = sadd.s32 1, %s2637_s26  ;;  %p219_p11 = scmp.eq.s32.totalorder %s218_s15, 0 }
  0x17   : > { %3146 = sst [smem:[#allocation12_spill]] %s3145_s14  ;;  %312 = sbr.rel (%p309_p10) target bundleno = 2264 (0x8d8), region = 48 }
  0x18   : > { %s2770_s17 = scalar_select %p219_p11, %s2637_s26, %s221_s16  }
  0x19   : > { %s3128_s18 = sand.u32 (!%p309_p10), 1, %s2633_s25   ;;  %p366_p12 = scmp.lt.s32.totalorder (!%p309_p10), %s2645_s28, 1 }
  0x1a   : > { %3147 = sst [smem:[#allocation13_spill]] %s2770_s17  ;;  %s2105_s19 = sshll.u32 (!%p309_p10), %s3128_s18, 3 }
  0x1b   : > { %p370_p13 = scmp.lt.s32.totalorder (!%p309_p10), %s2641_s27, 1  ;;  %s3148_s0 = sld [smem:[#allocation14_spill]] (!%p309_p10) }
  0x1c   : > { %s367_s20 = scalar_select %p366_p12, %s2645_s28, 1 }
  0x1d   : > { %s2779_s21 = scalar_select %p370_p13, %s2641_s27, 1 }
  0x1e   : > { %s2106_s22 = sshll.u32 %s367_s20, 3  ;;  %s3149_s1 = sld [smem:[#allocation15_spill]] }
  0x1f   : > { %s2436_s15 = smul.u32 192, %s2779_s21  ;;  %s2177_s16 = sshll.u32 %s2779_s21, 4 }
  0x20   : > { %s2110_s12 = sshll.u32 %s2779_s21, 3  ;;  %s2795_s26 = scalar_lea.vmem %s3120_s2, %s2177_s16 }
  0x21   : > { %s369_s10 = scalar_lea.vmem %s3148_s0, %s2106_s22  ;;  %s2800_s20 = scalar_lea.vmem %s3121_s3, %s2110_s12 }
  0x22   : > { %s2805_s9 = scalar_lea.vmem %s3122_s4, %s2177_s16  ;;  %s391_s30 = scalar_lea.vmem %s3123_s5, %s2779_s21 }
  0x23   : > { %s2179_s11 = sshll.u32 %s2779_s21, 5  ;;  %s2817_s17 = scalar_lea.vmem [#allocation2], %s2105_s19 }
  0x24   : > { %s2790_s18 = scalar_lea.vmem %s3149_s1, %s2436_s15  ;;  %s2815_s29 = scalar_lea.vmem %s3124_s6, %s2179_s11 }
  0x25   : > { %p2115_p0 = scmp.ne.s32.totalorder %s2641_s27, 0 }
  0x27   : > { %401 = sbr.rel (%p2115_p0) target bundleno = 46 (0x2e), region = 52 }
  0x2c   : > { %v402_v0 = vld [vmem:[%s369_s10] sm:$0xff]  ;;  %vm403_vm0 = vcmask 261120  }
  0x2d   : > { %404 = vst.msk [vmem:[%s2817_s17] sm:$0xff] %vm403_vm0, %v402_v0 }
  0x2e PF: > { %vm407_vm1 = vcmask 261120   ;;  %v2511_v8 = vld [vmem:[%s2790_s18 + $0x8] sm:$0xff]   ;;  %v2512_v9 = vld [vmem:[%s2790_s18 + $0x18] sm:$0xff]   ;;  %v2659_v10 = vmov 0.0   ;;  %v2513_v11 = vld [vmem:[%s2790_s18] sm:$0xff]   ;;  %vm2660_vm2 = vmmov 0   ;;  %v422_v16 = vlaneseq }
  0x2f   : > { %2248 = vmatprep.subr.bf16.mxu0 %v2659_v10  ;;  %2256 = vmatprep.subr.bf16.mxu1 %v2659_v10  ;;  %v2514_v12 = vld [vmem:[%s2790_s18 + $0x10] sm:$0xff]   ;;  %v2846_v19 = vld [vmem:[%s2800_s20] sm:$0xff]  ;;  %v2515_v27 = vld [vmem:[%s2790_s18 + $0x28] sm:$0xff]   ;;  %vm1120_vm3 = vcmask 64512   ;;  %vm1360_vm4 = vcmask 1043456   ;;  %vm1901_vm6 = vcmask 523264  }
  0x30   : > { %2249 = vmatpush3.bf16.msra.mxu0 %v2511_v8  ;;  %2257 = vmatpush3.bf16.msra.mxu1 %v2512_v9  ;;  %v2842_v17 = vshrl.u32 %v422_v16, 7  ;;  %v2516_v28 = vld [vmem:[%s2790_s18 + $0x38] sm:$0xff]   ;;  %v2517_v30 = vld [vmem:[%s2790_s18 + $0x20] sm:$0xff]   ;;  %v2518_v31 = vld [vmem:[%s2790_s18 + $0x30] sm:$0xff]   ;;  %s2174_s24 = sshll.u32 %s2645_s28, 7  ;;  %s3150_s28 = sand.u32 1, %s2633_s25  }
  0x31   : > { %2250 = vmatprep.subr.bf16.mxu0 %v2659_v10  ;;  %2258 = vmatprep.subr.bf16.mxu1 %v2659_v10  ;;  %v2519_v32 = vld [vmem:[%s2790_s18 + $0x48] sm:$0xff]   ;;  %v2520_v33 = vld [vmem:[%s2790_s18 + $0x58] sm:$0xff]   ;;  %v2521_v34 = vld [vmem:[%s2790_s18 + $0x40] sm:$0xff]   ;;  %s3062_s12 = scalar_lea.hbm %s3125_s7, %s2174_s24  ;;  %s1948_s14 = scalar_lea.sflag [#allocation3], %s3150_s28 }
  0x32   : > { %2252 = vmatprep.mubr.msk.bf16.mxu0 %vm2660_vm2, %v2659_v10  ;;  %2260 = vmatprep.mubr.msk.bf16.mxu1 %vm2660_vm2, %v2659_v10  ;;  %v424_v18 = vsub.s32 0, %v2842_v17  ;;  %v429_v20 = vsub.s32 1, %v2842_v17  ;;  %v2522_v35 = vld [vmem:[%s2790_s18 + $0x50] sm:$0xff]   ;;  %v2523_v36 = vld [vmem:[%s2790_s18 + $0x68] sm:$0xff]   ;;  %v2524_v37 = vld [vmem:[%s2790_s18 + $0x78] sm:$0xff]   ;;  %s2662_s19 = smov [#allocation2]  }
  0x33   : > { %v2525_v38 = vld [vmem:[%s2790_s18 + $0x60] sm:$0xff]   ;;  %v2526_v39 = vld [vmem:[%s2790_s18 + $0x70] sm:$0xff]   ;;  %v2527_v40 = vld [vmem:[%s2790_s18 + $0x88] sm:$0xff]   ;;  %s2569_s21 = sshll.u32 %s2662_s19, 4  ;;  %s2570_s21 = int_to_ptr.vmem [resolvable:$false] %s2569_s21 }
  0x34   : > { %v2822_v1 = vld [vmem:[%s2817_s17] sm:$0xff]  ;;  %2251 = vmatpush3.bf16.msra.mxu0 %v2513_v11  ;;  %2259 = vmatpush3.bf16.msra.mxu1 %v2514_v12  ;;  %v425_v21 = vrot.slane %v2846_v19, %v424_v18  ;;  %v430_v23 = vrot.slane %v2846_v19, %v429_v20  ;;  %v2528_v41 = vld [vmem:[%s2790_s18 + $0x98] sm:$0xff]   ;;  %v2530_v43 = vld [vmem:[%s2790_s18 + $0x90] sm:$0xff]   ;;  %s2571_s10 = scalar_lea.vmem %s2570_s21, 256 }
  0x35   : > { %v408_v2 = vsel %vm407_vm1, %v2822_v1, 0.0  ;;  %2264 = vmatprep.subr.bf16.mxu0 %v2659_v10  ;;  %2272 = vmatprep.subr.bf16.mxu1 %v2659_v10  ;;  %v2529_v42 = vld [vmem:[%s2790_s18 + $0x80] sm:$0xff]   ;;  %v2531_v44 = vld [vmem:[%s2790_s18 + $0xa8] sm:$0xff]   ;;  %v2532_v45 = vld [vmem:[%s2790_s18 + $0xb8] sm:$0xff]  }
  0x36   : > { %409 = vadd.xlane.f32.xlu0 %v408_v2  ;;  %v2533_v46 = vld [vmem:[%s2790_s18 + $0xa0] sm:$0xff]   ;;  %v2534_v47 = vld [vmem:[%s2790_s18 + $0xb0] sm:$0xff]  }
  0xbf   : > { %v410_v3 = vpop.xlane.xlu0 %409 }
  0xc0   : > { %v412_v4 = vmul.f32 0.03125, %v410_v3 }
  0xc2   : > { %v413_v5 = vsub.f32 %v2822_v1, %v412_v4 }
  0xc4   : > { %v414_v6 = vmul.f32 %v413_v5, %v413_v5 }
  0xc6   : > { %v415_v7 = vsel %vm407_vm1, %v414_v6, 0.0 }
  0xc7   : > { %416 = vadd.xlane.f32.xlu0 %v415_v7 }
 0x150   : > { %v417_v13 = vpop.xlane.xlu0 %416 }
 0x151   : > { %v418_v14 = vmul.f32 0.03125, %v417_v13 }
 0x153   : > { %v419_v15 = vadd.f32 1e-05, %v418_v14 }
 0x155   : > { %2541 = vrsqrt.f32 %v419_v15 }
 0x162   : > { %v2542_v22 = vpop.eup %2541 }
 0x163   : > { %v421_v24 = vmul.f32 %v2542_v22, %v413_v5 }
 0x165   : > { %v426_v25 = vmul.f32 %v425_v21, %v421_v24 }
 0x167   : > { %v431_v26 = vadd.f32 %v430_v23, %v426_v25 }
 0x169   : > { %v2853_v29 = vpack.c.bf16 %v431_v26, %v431_v26 }
 0x16b   : > { %2253 = vmatmul.mubr.msk.bf16.vlgmr.msra.gmra.mxu0 %vm407_vm1, %v2853_v29  ;;  %2261 = vmatmul.mubr.msk.bf16.vlgmr.msra.gmra.mxu1 %vm407_vm1, %v2853_v29 }
 0x16c   : > { %2265 = vmatpush3.bf16.msra.mxu0 %v2515_v27  ;;  %2273 = vmatpush3.bf16.msra.mxu1 %v2516_v28 }
 0x16d   : > { %2266 = vmatprep.subr.bf16.mxu0 %v2659_v10  ;;  %2274 = vmatprep.subr.bf16.mxu1 %v2659_v10 }
 0x16e   : > { %2268 = vmatprep.mubr.msk.bf16.mxu0 %vm2660_vm2, %v2659_v10  ;;  %2276 = vmatprep.mubr.msk.bf16.mxu1 %vm2660_vm2, %v2659_v10 }
 0x170   : > { %2267 = vmatpush3.bf16.msra.mxu0 %v2517_v30  ;;  %2275 = vmatpush3.bf16.msra.mxu1 %v2518_v31 }
 0x171   : > { %2280 = vmatprep.subr.bf16.mxu0 %v2659_v10  ;;  %2288 = vmatprep.subr.bf16.mxu1 %v2659_v10 }
 0x173   : > { %2269 = vmatmul.mubr.msk.bf16.vlgmr.msra.gmra.mxu0 %vm407_vm1, %v2853_v29  ;;  %2277 = vmatmul.mubr.msk.bf16.vlgmr.msra.gmra.mxu1 %vm407_vm1, %v2853_v29 }
 0x174   : > { %2281 = vmatpush3.bf16.msra.mxu0 %v2519_v32  ;;  %2289 = vmatpush3.bf16.msra.mxu1 %v2520_v33 }
 0x175   : > { %2282 = vmatprep.subr.bf16.mxu0 %v2659_v10  ;;  %2290 = vmatprep.subr.bf16.mxu1 %v2659_v10 }
 0x176   : > { %2284 = vmatprep.mubr.msk.bf16.mxu0 %vm2660_vm2, %v2659_v10  ;;  %2292 = vmatprep.mubr.msk.bf16.mxu1 %vm2660_vm2, %v2659_v10 }
 0x178   : > { %2283 = vmatpush3.bf16.msra.mxu0 %v2521_v34  ;;  %2291 = vmatpush3.bf16.msra.mxu1 %v2522_v35 }
 0x179   : > { %2296 = vmatprep.subr.bf16.mxu0 %v2659_v10  ;;  %2304 = vmatprep.subr.bf16.mxu1 %v2659_v10 }
 0x17b   : > { %2285 = vmatmul.mubr.msk.bf16.vlgmr.msra.gmra.mxu0 %vm407_vm1, %v2853_v29  ;;  %2293 = vmatmul.mubr.msk.bf16.vlgmr.msra.gmra.mxu1 %vm407_vm1, %v2853_v29 }
 0x17c   : > { %2297 = vmatpush3.bf16.msra.mxu0 %v2523_v36  ;;  %2305 = vmatpush3.bf16.msra.mxu1 %v2524_v37 }
 0x17d   : > { %2298 = vmatprep.subr.bf16.mxu0 %v2659_v10  ;;  %2306 = vmatprep.subr.bf16.mxu1 %v2659_v10 }
 0x17e   : > { %2300 = vmatprep.mubr.msk.bf16.mxu0 %vm2660_vm2, %v2659_v10  ;;  %2308 = vmatprep.mubr.msk.bf16.mxu1 %vm2660_vm2, %v2659_v10 }
 0x180   : > { %2299 = vmatpush3.bf16.msra.mxu0 %v2525_v38  ;;  %2307 = vmatpush3.bf16.msra.mxu1 %v2526_v39 }
 0x181   : > { %2312 = vmatprep.subr.bf16.mxu0 %v2659_v10  ;;  %2320 = vmatprep.subr.bf16.mxu1 %v2659_v10 }
 0x183   : > { %2301 = vmatmul.mubr.msk.bf16.vlgmr.msra.gmra.mxu0 %vm407_vm1, %v2853_v29  ;;  %2309 = vmatmul.mubr.msk.bf16.vlgmr.msra.gmra.mxu1 %vm407_vm1, %v2853_v29 }
 0x184   : > { %2313 = vmatpush3.bf16.msra.mxu0 %v2527_v40  ;;  %2321 = vmatpush3.bf16.msra.mxu1 %v2528_v41 }
 0x185   : > { %2314 = vmatprep.subr.bf16.mxu0 %v2659_v10  ;;  %2322 = vmatprep.subr.bf16.mxu1 %v2659_v10 }
 0x186   : > { %2316 = vmatprep.mubr.msk.bf16.mxu0 %vm2660_vm2, %v2659_v10  ;;  %2324 = vmatprep.mubr.msk.bf16.mxu1 %vm2660_vm2, %v2659_v10 }
 0x188   : > { %2315 = vmatpush3.bf16.msra.mxu0 %v2529_v42  ;;  %2323 = vmatpush3.bf16.msra.mxu1 %v2530_v43 }
 0x189   : > { %2328 = vmatprep.subr.bf16.mxu0 %v2659_v10  ;;  %2336 = vmatprep.subr.bf16.mxu1 %v2659_v10 }
 0x18b   : > { %2317 = vmatmul.mubr.msk.bf16.vlgmr.msra.gmra.mxu0 %vm407_vm1, %v2853_v29  ;;  %2325 = vmatmul.mubr.msk.bf16.vlgmr.msra.gmra.mxu1 %vm407_vm1, %v2853_v29 }
 0x18c   : > { %2329 = vmatpush3.bf16.msra.mxu0 %v2531_v44  ;;  %2337 = vmatpush3.bf16.msra.mxu1 %v2532_v45 }
 0x18d   : > { %2330 = vmatprep.subr.bf16.mxu0 %v2659_v10  ;;  %2338 = vmatprep.subr.bf16.mxu1 %v2659_v10 }
 0x18e   : > { %2332 = vmatprep.mubr.msk.bf16.mxu0 %vm2660_vm2, %v2659_v10  ;;  %2340 = vmatprep.mubr.msk.bf16.mxu1 %vm2660_vm2, %v2659_v10 }
 0x190   : > { %2331 = vmatpush3.bf16.msra.mxu0 %v2533_v46  ;;  %2339 = vmatpush3.bf16.msra.mxu1 %v2534_v47 }
 0x191   : > { %2344 = vmatprep.subr.bf16.mxu0 %v2659_v10  ;;  %2350 = vmatprep.subr.bf16.mxu1 %v2659_v10 }
 0x193   : > { %2333 = vmatmul.mubr.msk.bf16.vlgmr.msra.gmra.mxu0 %vm407_vm1, %v2853_v29  ;;  %2341 = vmatmul.mubr.msk.bf16.vlgmr.msra.gmra.mxu1 %vm407_vm1, %v2853_v29 }
 0x194   : > { %2346 = vmatprep.mubr.msk.bf16.mxu0 %vm2660_vm2, %v2659_v10  ;;  %2352 = vmatprep.mubr.msk.bf16.mxu1 %vm2660_vm2, %v2659_v10 }
 0x22b   : > { %v530_v48 = vpop.f32.mrf.mxu0  ;;  %v582_v49 = vpop.f32.mrf.mxu1 }
 0x22c   : > { %v1108_v12 = vmul.f32 0.35355338, %v530_v48  ;;  %v1109_v13 = vmul.f32 0.35355338, %v582_v49 }
 0x22d   : > { %v2254_v50 = vpop.f32.mrf.mxu0  ;;  %v2262_v51 = vpop.f32.mrf.mxu1 }
 0x22e   : > { %v1112_v20 = vpack.c.bf16 %v1108_v12, %v1108_v12  ;;  %v1113_v21 = vpack.c.bf16 %v1109_v13, %v1109_v13 }
 0x22f   : > { %v533_v52 = vpop.f32.mrf.mxu0  ;;  %v585_v53 = vpop.f32.mrf.mxu1 }
 0x231   : > { %v2255_v54 = vpop.f32.mrf.mxu0  ;;  %v2263_v55 = vpop.f32.mrf.mxu1 }
 0x233   : > { %v634_v56 = vpop.f32.mrf.mxu0  ;;  %v686_v57 = vpop.f32.mrf.mxu1 }
 0x234   : > { %v1110_v30 = vmul.f32 0.35355338, %v634_v56  ;;  %v1111_v31 = vmul.f32 0.35355338, %v686_v57 }
 0x235   : > { %v2270_v58 = vpop.f32.mrf.mxu0  ;;  %v2278_v59 = vpop.f32.mrf.mxu1 }
 0x236   : > { %v1114_v36 = vpack.c.bf16 %v1110_v30, %v1110_v30  ;;  %v1115_v37 = vpack.c.bf16 %v1111_v31, %v1111_v31 }
 0x237   : > { %v637_v60 = vpop.f32.mrf.mxu0  ;;  %v689_v61 = vpop.f32.mrf.mxu1 }
 0x239   : > { %v2271_v62 = vpop.f32.mrf.mxu0  ;;  %v2279_v63 = vpop.f32.mrf.mxu1 }
 0x23b   : > { %v738_v0 = vpop.f32.mrf.mxu0  ;;  %v790_v2 = vpop.f32.mrf.mxu1 }
 0x23c   : > { %v1116_v3 = vpack.c.bf16 %v738_v0, %v738_v0  ;;  %v1117_v4 = vpack.c.bf16 %v790_v2, %v790_v2 }
 0x23d   : > { %v2286_v5 = vpop.f32.mrf.mxu0  ;;  %v2294_v6 = vpop.f32.mrf.mxu1 }
 0x23e   : > { %v1125_v7 = vsel %vm1120_vm3, %v1116_v3, 0  ;;  %v1171_v8 = vsel %vm1120_vm3, %v1117_v4, 0 }
 0x23f   : > { %v741_v9 = vpop.f32.mrf.mxu0  ;;  %v793_v11 = vpop.f32.mrf.mxu1  ;;  %2345 = vmatpush3.bf16.xpose.msra.mxu0 %v1125_v7  ;;  %2351 = vmatpush3.bf16.xpose.msra.mxu1 %v1171_v8 }
 0x240   : > { %2356 = vmatprep.subr.bf16.mxu0 %v2659_v10  ;;  %2362 = vmatprep.subr.bf16.mxu1 %v2659_v10 }
 0x241   : > { %v2287_v14 = vpop.f32.mrf.mxu0  ;;  %v2295_v15 = vpop.f32.mrf.mxu1 }
 0x243   : > { %v842_v16 = vpop.f32.mrf.mxu0  ;;  %v894_v18 = vpop.f32.mrf.mxu1 }
 0x244   : > { %v1118_v22 = vpack.c.bf16 %v842_v16, %v842_v16  ;;  %v1119_v23 = vpack.c.bf16 %v894_v18, %v894_v18 }
 0x245   : > { %v2302_v24 = vpop.f32.mrf.mxu0  ;;  %v2310_v25 = vpop.f32.mrf.mxu1 }
 0x246   : > { %v1217_v26 = vsel %vm1120_vm3, %v1118_v22, 0  ;;  %v1263_v27 = vsel %vm1120_vm3, %v1119_v23, 0  ;;  %2347 = vmatmul.mubr.msk.bf16.vlgmr.msra.gmra.mxu0 %vm1120_vm3, %v1112_v20  ;;  %2353 = vmatmul.mubr.msk.bf16.vlgmr.msra.gmra.mxu1 %vm1120_vm3, %v1113_v21 }
 0x247   : > { %v845_v28 = vpop.f32.mrf.mxu0  ;;  %v897_v29 = vpop.f32.mrf.mxu1  ;;  %2357 = vmatpush3.bf16.xpose.msra.mxu0 %v1217_v26  ;;  %2363 = vmatpush3.bf16.xpose.msra.mxu1 %v1263_v27 }
 0x248   : > { %2358 = vmatprep.mubr.msk.bf16.mxu0 %vm2660_vm2, %v2659_v10  ;;  %2364 = vmatprep.mubr.msk.bf16.mxu1 %vm2660_vm2, %v2659_v10 }
 0x249   : > { %v2303_v32 = vpop.f32.mrf.mxu0  ;;  %v2311_v33 = vpop.f32.mrf.mxu1  ;;  %2368 = vmatprep.subr.bf16.mxu0 %v2659_v10  ;;  %2374 = vmatprep.subr.bf16.mxu1 %v2659_v10 }
 0x24b   : > { %v946_v34 = vpop.f32.mrf.mxu0  ;;  %v998_v35 = vpop.f32.mrf.mxu1 }
 0x24c   : > { %v1353_v38 = vpack.c.bf16 %v946_v34, %v946_v34  ;;  %v1354_v39 = vpack.c.bf16 %v998_v35, %v998_v35 }
 0x24d   : > { %v2318_v40 = vpop.f32.mrf.mxu0  ;;  %v2326_v41 = vpop.f32.mrf.mxu1 }
 0x24e   : > { %v1362_v42 = vsel %vm1360_vm4, %v1353_v38, 0  ;;  %v1408_v43 = vsel %vm1360_vm4, %v1354_v39, 0  ;;  %2359 = vmatmul.mubr.msk.bf16.vlgmr.msra.gmra.mxu0 %vm1120_vm3, %v1114_v36  ;;  %2365 = vmatmul.mubr.msk.bf16.vlgmr.msra.gmra.mxu1 %vm1120_vm3, %v1115_v37 }
 0x24f   : > { %v949_v44 = vpop.f32.mrf.mxu0  ;;  %v1001_v45 = vpop.f32.mrf.mxu1  ;;  %2369 = vmatpush3.bf16.msra.mxu0 %v1362_v42  ;;  %2375 = vmatpush3.bf16.msra.mxu1 %v1408_v43 }
 0x250   : > { %2370 = vmatprep.mubr.msk.bf16.mxu0 %vm2660_vm2, %v2659_v10  ;;  %2380 = vmatprep.subr.bf16.mxu0 %v2659_v10 }
 0x251   : > { %v2319_v46 = vpop.f32.mrf.mxu0  ;;  %v2327_v47 = vpop.f32.mrf.mxu1  ;;  %2376 = vmatprep.mubr.msk.bf16.mxu1 %vm2660_vm2, %v2659_v10  ;;  %2386 = vmatprep.subr.bf16.mxu1 %v2659_v10 }
 0x253   : > { %v2965_v48 = vpop.f32.mrf.mxu0  ;;  %v2967_v49 = vpop.f32.mrf.mxu1 }
 0x254   : > { %v1355_v41 = vpack.c.bf16 %v2965_v48, %v2965_v48  ;;  %v1356_v46 = vpack.c.bf16 %v2967_v49, %v2967_v49 }
 0x255   : > { %v2334_v50 = vpop.f32.mrf.mxu0  ;;  %v2342_v51 = vpop.f32.mrf.mxu1 }
 0x256   : > { %v1454_v45 = vsel %vm1360_vm4, %v1355_v41, 0 }
 0x257   : > { %v1053_v52 = vpop.f32.mrf.mxu0  ;;  %v1105_v53 = vpop.f32.mrf.mxu1 }
 0x258   : > { %v1500_v52 = vsel %vm1360_vm4, %v1356_v46, 0  ;;  %v1546_v53 = vld [vmem:[%s2795_s26] sm:$0xf] }
 0x259   : > { %v2335_v54 = vpop.f32.mrf.mxu0  ;;  %v2343_v55 = vpop.f32.mrf.mxu1 }
 0x306   : > { %v1161_v56 = vpop.f32.mrf.mxu0  ;;  %v1207_v57 = vpop.f32.mrf.mxu1 }
 0x307   : > { %v1305_v58 = vsel %vm1120_vm3, %v1161_v56, -inf  ;;  %v1308_v63 = vsel %vm1120_vm3, %v1207_v57, -inf }
 0x308   : > { %v2354_v59 = vpop.f32.mrf.mxu1  ;;  %1306 = vmax.xlane.f32.xlu1 %v1305_v58  ;;  %v2348_v60 = vpop.f32.mrf.mxu0  ;;  %v1547_v58 = vld [vmem:[%s2795_s26 + $0x4] sm:$0xf] }
 0x309   : > { %v1600_v59 = vsel %vm1360_vm4, %v1547_v58, 0  ;;  %v1548_v60 = vld [vmem:[%s2795_s26 + $0x8] sm:$0xf]  ;;  %v2536_v58 = vld [vmem:[%s2805_s9] sm:$0xff]  }
 0x30a   : > { %v1164_v61 = vpop.f32.mrf.mxu0  ;;  %v1210_v62 = vpop.f32.mrf.mxu1 }
 0x30c   : > { %v2355_v0 = vpop.f32.mrf.mxu1  ;;  %1309 = vmax.xlane.f32.xlu1 %v1308_v63  ;;  %v2349_v2 = vpop.f32.mrf.mxu0  ;;  %v1646_v63 = vsel %vm1360_vm4, %v1548_v60, 0 }
 0x30d   : > { %v1549_v2 = vld [vmem:[%s2795_s26 + $0xc] sm:$0xf]  ;;  %s1961_s26 = sshll.u32 %s2817_s17, 4  ;;  %s3064_s26 = int_to_ptr.vmem [resolvable:$true] %s1961_s26 }
 0x30e   : > { %v1253_v3 = vpop.f32.mrf.mxu0  ;;  %v1299_v4 = vpop.f32.mrf.mxu1  ;;  %s2565_s18 = scalar_lea.vmem %s3064_s26, 128  ;;  %p2572_p5 = scmp.lt.s32.totalorder %s3064_s26, %s2570_s21 }
 0x30f   : > { %v1314_v5 = vsel %vm1120_vm3, %v1299_v4, -inf  ;;  %v1311_v6 = vsel %vm1120_vm3, %v1253_v3, -inf  ;;  %p2566_p1 = scmp.ne.s32.totalorder %s3064_s26, %s2565_s18  ;;  %p2573_p6 = scmp.lt.s32.totalorder %s2571_s10, %s2565_s18 }
 0x310   : > { %v2366_v7 = vpop.f32.mrf.mxu1  ;;  %1315 = vmax.xlane.f32.xlu1 %v1314_v5  ;;  %1312 = vmax.xlane.f32.xlu0 %v1311_v6  ;;  %v2360_v8 = vpop.f32.mrf.mxu0  ;;  %v1692_v6 = vsel %vm1360_vm4, %v1549_v2, 0 }
 0x311   : > { %p2567_p2 = pnand %p2566_p1, %p2752_p3  ;;  %p2574_p7 = por %p2573_p6, %p2572_p5 }
 0x312   : > { %v1256_v9 = vpop.f32.mrf.mxu0  ;;  %v1302_v11 = vpop.f32.mrf.mxu1 }
 0x313   : > { %p2568_p4 = pneg %p2567_p2 }
 0x314   : > { %v2361_v12 = vpop.f32.mrf.mxu0  ;;  %v2367_v13 = vpop.f32.mrf.mxu1 }
 0x315   : > { %p2575_p8 = pnand %p2574_p7, %p2568_p4 }
 0x391   : > { %v1307_v14 = vpop.xlane.xlu1 %1306 }
 0x392   : > { %v1317_v15 = vsub.f32 %v1161_v56, %v1307_v14  ;;  %v1554_v56 = vsel %vm1360_vm4, %v1546_v53, 0 }
 0x394   : > { %v1321_v16 = vmul.f32 1.442695, %v1317_v15 }
 0x395   : > { %v1310_v18 = vpop.xlane.xlu1 %1309 }
 0x396   : > { %2543 = vpow2.f32 %v1321_v16  ;;  %v1318_v20 = vsub.f32 %v1207_v57, %v1310_v18 }
 0x398   : > { %v1323_v21 = vmul.f32 1.442695, %v1318_v20 }
 0x399   : > { %v1316_v22 = vpop.xlane.xlu1 %1315  ;;  %v1313_v23 = vpop.xlane.xlu0 %1312 }
 0x39a   : > { %2545 = vpow2.f32 %v1323_v21  ;;  %v1320_v24 = vsub.f32 %v1299_v4, %v1316_v22  ;;  %v1319_v25 = vsub.f32 %v1253_v3, %v1313_v23 }
 0x39c   : > { %v1327_v26 = vmul.f32 1.442695, %v1320_v24  ;;  %v1325_v27 = vmul.f32 1.442695, %v1319_v25 }
 0x39e   : > { %2547 = vpow2.f32 %v1327_v26 }
 0x39f   : > { %2549 = vpow2.f32 %v1325_v27 }
 0x3a3   : > { %v2544_v28 = vpop.eup %2543 }
 0x3a4   : > { %v1329_v29 = vsel %vm1120_vm3, %v2544_v28, 0.0 }
 0x3a5   : > { %1330 = vadd.xlane.f32.xlu0 %v1329_v29 }
 0x3a7   : > { %v2546_v30 = vpop.eup %2545 }
 0x3a8   : > { %v1332_v31 = vsel %vm1120_vm3, %v2546_v30, 0.0 }
 0x3a9   : > { %1333 = vadd.xlane.f32.xlu1 %v1332_v31 }
 0x3ab   : > { %v2548_v32 = vpop.eup %2547 }
 0x3ac   : > { %v2550_v33 = vpop.eup %2549  ;;  %v1338_v34 = vsel %vm1120_vm3, %v2548_v32, 0.0 }
 0x3ad   : > { %1339 = vadd.xlane.f32.xlu1 %v1338_v34  ;;  %v1335_v35 = vsel %vm1120_vm3, %v2550_v33, 0.0 }
 0x3ae   : > { %1336 = vadd.xlane.f32.xlu0 %v1335_v35 }
 0x42e   : > { %v1331_v36 = vpop.xlane.xlu0 %1330 }
 0x42f   : > { %2551 = vrcp.f32 %v1331_v36 }
 0x432   : > { %v1334_v37 = vpop.xlane.xlu1 %1333 }
 0x433   : > { %2553 = vrcp.f32 %v1334_v37 }
 0x436   : > { %v1340_v38 = vpop.xlane.xlu1 %1339 }
 0x437   : > { %2555 = vrcp.f32 %v1340_v38  ;;  %v1337_v39 = vpop.xlane.xlu0 %1336 }
 0x438   : > { %2557 = vrcp.f32 %v1337_v39 }
 0x43c   : > { %v2552_v40 = vpop.eup %2551 }
 0x43d   : > { %v1345_v42 = vmul.f32 %v2552_v40, %v2544_v28 }
 0x43f   : > { %v1349_v43 = vpack.c.bf16 %v1345_v42, %v1345_v42 }
 0x440   : > { %v2554_v44 = vpop.eup %2553 }
 0x441   : > { %2371 = vmatmul.mubr.msk.bf16.vlgmr.msra.gmra.mxu0 %vm1120_vm3, %v1349_v43  ;;  %v1346_v47 = vmul.f32 %v2554_v44, %v2546_v30 }
 0x442   : > { %2381 = vmatpush3.bf16.msra.mxu0 %v1454_v45  ;;  %2382 = vmatprep.mubr.msk.bf16.mxu0 %vm2660_vm2, %v2659_v10 }
 0x443   : > { %v1350_v50 = vpack.c.bf16 %v1346_v47, %v1346_v47  ;;  %2392 = vmatprep.subr.bf16.mxu0 %v2659_v10 }
 0x444   : > { %v2556_v48 = vpop.eup %2555 }
 0x445   : > { %v2558_v51 = vpop.eup %2557  ;;  %2377 = vmatmul.mubr.msk.bf16.vlgmr.msra.gmra.mxu1 %vm1120_vm3, %v1350_v50  ;;  %v1348_v54 = vmul.f32 %v2556_v48, %v2548_v32  ;;  %v1743_v32 = vsub.s32 2, %v2842_v17 }
 0x446   : > { %2387 = vmatpush3.bf16.msra.mxu1 %v1500_v52  ;;  %v1347_v49 = vmul.f32 %v2558_v51, %v2550_v33  ;;  %2388 = vmatprep.mubr.msk.bf16.mxu1 %vm2660_vm2, %v2659_v10 }
 0x447   : > { %2398 = vmatprep.subr.bf16.mxu1 %v2659_v10  ;;  %v1352_v57 = vpack.c.bf16 %v1348_v54, %v1348_v54  ;;  %v1744_v41 = vrot.slane %v2846_v19, %v1743_v32 }
 0x448   : > { %v1351_v55 = vpack.c.bf16 %v1347_v49, %v1347_v49 }
 0x44a   : > { %2383 = vmatmul.mubr.msk.bf16.vlgmr.msra.gmra.mxu0 %vm1120_vm3, %v1351_v55 }
 0x44b   : > { %2393 = vmatpush3.bf16.msra.mxu0 %v1554_v56  ;;  %2394 = vmatprep.mubr.msk.bf16.mxu0 %vm2660_vm2, %v2659_v10 }
 0x44c   : > { %2404 = vmatprep.subr.bf16.mxu0 %v2659_v10 }
 0x44d   : > { %2389 = vmatmul.mubr.msk.bf16.vlgmr.msra.gmra.mxu1 %vm1120_vm3, %v1352_v57  ;;  %v2535_v57 = vld [vmem:[%s2805_s9 + $0x8] sm:$0xff]  }
 0x44e   : > { %2400 = vmatprep.mubr.msk.bf16.mxu1 %vm2660_vm2, %v2659_v10  ;;  %2399 = vmatpush3.bf16.msra.mxu1 %v1600_v59 }
 0x44f   : > { %2410 = vmatprep.subr.bf16.mxu1 %v2659_v10 }
 0x501   : > { %v1398_v61 = vpop.f32.mrf.mxu0 }
 0x502   : > { %v1542_v62 = vpack.c.bf16 %v1398_v61, %v1398_v61  ;;  %v1762_v61 = vsub.s32 3, %v2842_v17 }
 0x503   : > { %v2372_v0 = vpop.f32.mrf.mxu0 }
 0x504   : > { %2395 = vmatmul.mubr.msk.bf16.vlgmr.msra.gmra.mxu0 %vm1120_vm3, %v1542_v62  ;;  %v1767_v62 = vsub.s32 4, %v2842_v17 }
 0x505   : > { %v1401_v3 = vpop.f32.mrf.mxu0  ;;  %v1444_v4 = vpop.f32.mrf.mxu1  ;;  %2405 = vmatpush3.bf16.msra.mxu0 %v1646_v63  ;;  %2406 = vmatprep.mubr.msk.bf16.mxu0 %vm2660_vm2, %v2659_v10  ;;  %v1763_v63 = vrot.slane %v2846_v19, %v1762_v61 }
 0x506   : > { %v1543_v5 = vpack.c.bf16 %v1444_v4, %v1444_v4  ;;  %2416 = vmatprep.subr.bf16.mxu0 %v2659_v10  ;;  %v1768_v3 = vrot.slane %v2846_v19, %v1767_v62 }
 0x507   : > { %v2373_v7 = vpop.f32.mrf.mxu0  ;;  %v2378_v8 = vpop.f32.mrf.mxu1 }
 0x508   : > { %2401 = vmatmul.mubr.msk.bf16.vlgmr.msra.gmra.mxu1 %vm1120_vm3, %v1543_v5  ;;  %v2537_v7 = vld [vmem:[%s2815_s29 + $0x18] sm:$0xff]   ;;  %v2538_v8 = vld [vmem:[%s2815_s29 + $0x10] sm:$0xff]  }
 0x509   : > { %v1447_v9 = vpop.f32.mrf.mxu1  ;;  %2411 = vmatpush3.bf16.msra.mxu1 %v1692_v6  ;;  %2412 = vmatprep.mubr.msk.bf16.mxu1 %vm2660_vm2, %v2659_v10 }
 0x50a   : > { %v1490_v11 = vpop.f32.mrf.mxu0  ;;  %2424 = vmatprep.subr.bf16.mxu1 %v2659_v10  ;;  %v2539_v9 = vld [vmem:[%s2815_s29 + $0x8] sm:$0xff]  }
 0x50b   : > { %v1544_v12 = vpack.c.bf16 %v1490_v11, %v1490_v11  ;;  %v2379_v13 = vpop.f32.mrf.mxu1  ;;  %v2540_v11 = vld [vmem:[%s2815_s29] sm:$0xff]  }
 0x50c   : > { %v2384_v14 = vpop.f32.mrf.mxu0 }
 0x50d   : > { %2407 = vmatmul.mubr.msk.bf16.vlgmr.msra.gmra.mxu0 %vm1120_vm3, %v1544_v12  ;;  %v1536_v15 = vpop.f32.mrf.mxu1  ;;  %v2164_v12 = vld [vmem:[%s391_s30] ss:$0 sm:$0xff] }
 0x50e   : > { %v1493_v16 = vpop.f32.mrf.mxu0  ;;  %v1545_v18 = vpack.c.bf16 %v1536_v15, %v1536_v15  ;;  %2420 = vmatprep.mubr.msk.bf16.mxu0 %vm2660_vm2, %v2659_v10  ;;  %2417 = vmatpush3.bf16.msra.mxu0 %v2535_v57 }
 0x50f   : > { %v2390_v20 = vpop.f32.mrf.mxu1  ;;  %2418 = vmatprep.subr.bf16.mxu0 %v2659_v10 }
 0x510   : > { %v2385_v21 = vpop.f32.mrf.mxu0  ;;  %2413 = vmatmul.mubr.msk.bf16.vlgmr.msra.gmra.mxu1 %vm1120_vm3, %v1545_v18 }
 0x511   : > { %v1539_v22 = vpop.f32.mrf.mxu1  ;;  %2432 = vmatprep.mubr.msk.bf16.mxu1 %vm2660_vm2, %v2659_v10  ;;  %2425 = vmatpush3.bf16.msra.mxu1 %v2537_v7 }
 0x512   : > { %2419 = vmatpush3.bf16.msra.mxu0 %v2536_v58  ;;  %2426 = vmatprep.subr.bf16.mxu1 %v2659_v10 }
 0x513   : > { %v2391_v23 = vpop.f32.mrf.mxu1 }
 0x515   : > { %2427 = vmatpush3.bf16.msra.mxu1 %v2538_v8 }
 0x516   : > { %2428 = vmatprep.subr.bf16.mxu1 %v2659_v10 }
 0x519   : > { %2429 = vmatpush3.bf16.msra.mxu1 %v2539_v9 }
 0x51a   : > { %2430 = vmatprep.subr.bf16.mxu1 %v2659_v10 }
 0x51d   : > { %2431 = vmatpush3.bf16.msra.mxu1 %v2540_v11 }
 0x5c4   : > { %v1590_v24 = vpop.f32.mrf.mxu0 }
 0x5c5   : > { %v1734_v33 = vsel %vm407_vm1, %v1590_v24, 0.0 }
 0x5c6   : > { %v2396_v25 = vpop.f32.mrf.mxu0 }
 0x5c8   : > { %v1593_v26 = vpop.f32.mrf.mxu0  ;;  %v1636_v27 = vpop.f32.mrf.mxu1 }
 0x5c9   : > { %v1735_v30 = vsel %vm407_vm1, %v1636_v27, 0.0 }
 0x5ca   : > { %v2397_v28 = vpop.f32.mrf.mxu0  ;;  %v2402_v29 = vpop.f32.mrf.mxu1  ;;  %v1736_v35 = vadd.f32 %v1735_v30, %v1734_v33 }
 0x5cc   : > { %v1639_v31 = vpop.f32.mrf.mxu1 }
 0x5cd   : > { %v1682_v34 = vpop.f32.mrf.mxu0 }
 0x5ce   : > { %v1737_v36 = vsel %vm407_vm1, %v1682_v34, 0.0  ;;  %v2403_v37 = vpop.f32.mrf.mxu1 }
 0x5cf   : > { %v2408_v38 = vpop.f32.mrf.mxu0  ;;  %v1738_v39 = vadd.f32 %v1737_v36, %v1736_v35 }
 0x5d0   : > { %v1728_v40 = vpop.f32.mrf.mxu1 }
 0x5d1   : > { %v1685_v42 = vpop.f32.mrf.mxu0  ;;  %v1739_v43 = vsel %vm407_vm1, %v1728_v40, 0.0 }
 0x5d2   : > { %v1740_v44 = vadd.f32 %v1739_v43, %v1738_v39  ;;  %v2414_v45 = vpop.f32.mrf.mxu1  ;;  %v2661_v39 = vmov -1.0  }
 0x5d3   : > { %v2409_v46 = vpop.f32.mrf.mxu0 }
 0x5d4   : > { %v1745_v47 = vadd.f32 %v1744_v41, %v1740_v44  ;;  %v1731_v50 = vpop.f32.mrf.mxu1  ;;  %v1875_v46 = vsub.s32 5, %v2842_v17 }
 0x5d6   : > { %v2415_v48 = vpop.f32.mrf.mxu1  ;;  %v3028_v51 = vadd.f32 %v1745_v47, %v2822_v1  ;;  %v1876_v47 = vrot.slane %v2846_v19, %v1875_v46 }
 0x5d8   : > { %v1747_v52 = vsel %vm407_vm1, %v3028_v51, 0.0 }
 0x5d9   : > { %1748 = vadd.xlane.f32.xlu0 %v1747_v52 }
 0x662   : > { %v1749_v53 = vpop.xlane.xlu0 %1748 }
 0x663   : > { %v1750_v49 = vmul.f32 0.03125, %v1749_v53 }
 0x665   : > { %v1751_v54 = vsub.f32 %v3028_v51, %v1750_v49 }
 0x667   : > { %v1752_v55 = vmul.f32 %v1751_v54, %v1751_v54 }
 0x669   : > { %v1753_v56 = vsel %vm407_vm1, %v1752_v55, 0.0 }
 0x66a   : > { %1754 = vadd.xlane.f32.xlu1 %v1753_v56 }
 0x6f3   : > { %v1755_v1 = vpop.xlane.xlu1 %1754 }
 0x6f4   : > { %v1756_v59 = vmul.f32 0.03125, %v1755_v1 }
 0x6f6   : > { %v1757_v60 = vadd.f32 1e-05, %v1756_v59 }
 0x6f8   : > { %2559 = vrsqrt.f32 %v1757_v60 }
 0x705   : > { %v2560_v0 = vpop.eup %2559 }
 0x706   : > { %v1759_v2 = vmul.f32 %v2560_v0, %v1751_v54 }
 0x708   : > { %v1764_v4 = vmul.f32 %v1763_v63, %v1759_v2 }
 0x70a   : > { %v1769_v5 = vadd.f32 %v1768_v3, %v1764_v4 }
 0x70c   : > { %v1770_v6 = vpack.c.bf16 %v1769_v5, %v1769_v5 }
 0x70e   : > { %2421 = vmatmul.mubr.msk.bf16.vlgmr.msra.gmra.mxu0 %vm407_vm1, %v1770_v6 }
 0x7ce   : > { %v1831_v13 = vpop.f32.mrf.mxu0 }
 0x7cf   : > { %v1832_v14 = vadd.f32 %v2164_v12, %v1831_v13 }
 0x7d0   : > { %v2422_v15 = vpop.f32.mrf.mxu0 }
 0x7d1   : > { %v1838_v16 = vmul.f32 0.70710677, %v1832_v14  ;;  %v1837_v42 = vmul.f32 0.5, %v1832_v14 }
 0x7d2   : > { %v1834_v18 = vpop.f32.mrf.mxu0 }
 0x7d3   : > { %v1841_v20 = vand.u32 2147483647, %v1838_v16  ;;  %vm1839_vm5 = vcmp.ge.f32.partialorder %v1838_v16, 0.0 }
 0x7d4   : > { %v2423_v21 = vpop.f32.mrf.mxu0  ;;  %v1840_v40 = vsel %vm1839_vm5, 1.0, %v2661_v39 }
 0x7d5   : > { %v1842_v22 = vmul.f32 0.3275911, %v1841_v20  ;;  %v1855_v24 = vsub.f32 0.0, %v1841_v20 }
 0x7d7   : > { %v1843_v23 = vadd.f32 1.0, %v1842_v22  ;;  %v1856_v25 = vmul.f32 %v1855_v24, %v1841_v20 }
 0x7d9   : > { %2561 = vrcp.f32 %v1843_v23  ;;  %v1857_v27 = vmul.f32 1.442695, %v1856_v25 }
 0x7db   : > { %2563 = vpow2.f32 %v1857_v27 }
 0x7e6   : > { %v2562_v10 = vpop.eup %2561 }
 0x7e7   : > { %v1846_v26 = vmul.f32 1.0614054, %v2562_v10 }
 0x7e8   : > { %v2564_v36 = vpop.eup %2563 }
 0x7e9   : > { %v1847_v28 = vadd.f32 -1.4531521, %v1846_v26 }
 0x7eb   : > { %v1848_v29 = vmul.f32 %v2562_v10, %v1847_v28 }
 0x7ed   : > { %v1849_v30 = vadd.f32 1.4214138, %v1848_v29 }
 0x7ef   : > { %v1850_v31 = vmul.f32 %v2562_v10, %v1849_v30 }
 0x7f1   : > { %v1851_v32 = vadd.f32 -0.28449672, %v1850_v31 }
 0x7f3   : > { %v1852_v33 = vmul.f32 %v2562_v10, %v1851_v32 }
 0x7f5   : > { %v1853_v34 = vadd.f32 0.2548296, %v1852_v33 }
 0x7f7   : > { %v1854_v35 = vmul.f32 %v2562_v10, %v1853_v34 }
 0x7f9   : > { %v1859_v37 = vmul.f32 %v2564_v36, %v1854_v35 }
 0x7fb   : > { %v1860_v38 = vsub.f32 1.0, %v1859_v37 }
 0x7fd   : > { %v1861_v41 = vmul.f32 %v1860_v38, %v1840_v40 }
 0x7ff   : > { %v1862_v43 = vadd.f32 1.0, %v1861_v41 }
 0x801   : > { %v1863_v44 = vmul.f32 %v1862_v43, %v1837_v42 }
 0x803   : > { %v1864_v45 = vpack.c.bf16 %v1863_v44, %v1863_v44 }
 0x805   : > { %2433 = vmatmul.mubr.msk.bf16.vlgmr.msra.gmra.mxu1 %vm1901_vm6, %v1864_v45 }
 0x8c5   : > { %v1939_v50 = vpop.f32.mrf.mxu1 }
 0x8c6   : > { %v1940_v48 = vadd.f32 %v1939_v50, %v1876_v47 }
 0x8c7   : > { %v2434_v52 = vpop.f32.mrf.mxu1 }
 0x8c8   : > { %v1945_v53 = vadd.f32 %v1940_v48, %v3028_v51 }
 0x8c9   : > { %v1942_v17 = vpop.f32.mrf.mxu1 }
 0x8ca   : > { %1946 = vst.msk [vmem:[%s2817_s17] sm:$0xff] %vm407_vm1, %v1945_v53 }
 0x8cb   : > { %v2435_v19 = vpop.f32.mrf.mxu1 }
 0x8cc   : > { %2578 = shalt.err (!%p2575_p8)
}
 0x8cd   : > { %s2579_s16 = scalar_lea.hbm %s3062_s12, 128  ;;  %s2583_s22 = scalar_lea.hbm %s3125_s7, 256 }
 0x8ce   : > { %p2580_p10 = scmp.ne.s32.totalorder %s3062_s12, %s2579_s16  ;;  %p2584_p13 = scmp.lt.s32.totalorder %s3062_s12, %s3125_s7 }
 0x8cf   : > { %p2585_p0 = scmp.lt.s32.totalorder %s2583_s22, %s2579_s16 }
 0x8d0   : > { %p2581_p11 = pnand %p2580_p10, %p2752_p3 }
 0x8d1   : > { %p2586_p1 = por %p2585_p0, %p2584_p13 }
 0x8d2   : > { %p2582_p12 = pneg %p2581_p11 }
 0x8d4   : > { %p2587_p2 = pnand %p2586_p1, %p2582_p12 }
 0x8d6   : > { %2590 = shalt.err (!%p2587_p2)
}
 0x8d7   : > { %2437 = dma.vmem_to_hbm [thread:$0]  (%p2752_p3), %s3064_s26, 128, %s3062_s12, %s1948_s14  }
 0x8d8 PF: > { %s3151_s11 = sld [smem:[#allocation9_spill]] }
 0x8d9   : > { %s3152_s15 = sld [smem:[#allocation5_spill]] }
 0x8de   : > { %p2443_p4 = scmp.ge.s32.totalorder %s3151_s11, 2 }
 0x8df   : > { %s1973_s17 = sand.u32 1, %s3152_s15  }
 0x8e0   : > { %p2440_p5 = pnand %p2443_p4, %p2762_p9  ;;  %s1974_s0 = scalar_lea.sflag [#allocation3], %s1973_s17 }
 0x8e2   : > { %p2441_p6 = pneg %p2440_p5 }
 0x8e4   : > { %2624 = dma.done.wait (%p2441_p6), %s1974_s0, 128  }
 0x8e5   : > { %2626 = vsyncadd (%p2441_p6), %s1974_s0, 4294967168  ;;  %s20_s8 = sadd.s32 1, %s3151_s11   ;;  %s3154_s13 = sld [smem:[#allocation6_spill]] }
 0x8e6   : > { %p17_p7 = scmp.ge.s32.totalorder %s20_s8, 6   ;;  %s3155_s26 = sld [smem:[#allocation13_spill]] }
 0x8e7   : > { %s3156_s27 = sld [smem:[#allocation7_spill]]  ;;  %s3160_s24 = smov %s2633_s25 }
 0x8e8   : > { %s3157_s28 = sld [smem:[#allocation8_spill]]  ;;  %19 = sbr.rel (!%p17_p7) target bundleno = 8 (0x8), region = 105 }
 0x8e9   : > { %s3158_s29 = sld [smem:[#allocation10_spill]] }
 0x8ea   : > { %s3159_s30 = sld [smem:[#allocation11_spill]] }
 0x8eb   : > { %s3161_s25 = smov %s3154_s13 }
 0x8ed   :  { %1979 = vsyncpa [#allocation3], 1 }
 0x8ee   :  { %1981 = vsyncpa [#allocation3 + $0x1], 1 }

</bundles_post_ra>
